<compile_context>
chip_gen: v5e
topology: v5e:2x2
jax: 0.10.0
libtpu: 0.0.40
codegen_flags: <defaults>
</compile_context>

<pallas_src>
import functools

import jax
import jax.numpy as jnp
from jax.experimental import pallas as pl
from jax.experimental.pallas import tpu as pltpu


def _mf_kernel(block_b, nu, ni, num_users, num_items,
               user_idx_ref, item_idx_ref,        # VMEM int32 (block_b*nu, 1), (block_b*ni, 1)
               user_table_ref, item_table_ref,    # VMEM (num_users, D), (num_items, D)
               o_ref):                            # VMEM (block_b, nu, ni)
    dt = user_table_ref.dtype

    # Vectorized fused gather: one-hot @ table on the MXU (exact row select).
    u_onehot = (user_idx_ref[...] ==
                jax.lax.broadcasted_iota(jnp.int32, (block_b * nu, num_users), 1)
                ).astype(dt)                                        # (block_b*nu, E_u)
    i_onehot = (item_idx_ref[...] ==
                jax.lax.broadcasted_iota(jnp.int32, (block_b * ni, num_items), 1)
                ).astype(dt)                                        # (block_b*ni, E_i)

    u_emb = jnp.dot(u_onehot, user_table_ref[...],
                    preferred_element_type=jnp.float32)             # (block_b*nu, D)
    i_emb = jnp.dot(i_onehot, item_table_ref[...],
                    preferred_element_type=jnp.float32)             # (block_b*ni, D)

    # One batched matmul + one store for the whole batch block.
    scores = jnp.einsum(
        "bud,bid->bui",
        u_emb.reshape(block_b, nu, -1),
        i_emb.reshape(block_b, ni, -1),
        preferred_element_type=jnp.float32)                         # (block_b, nu, ni)
    o_ref[...] = scores.astype(o_ref.dtype)


def _pick_block_b(batch, nu, ni, min_steps=2):
    """Pick a batch block size.

    Legality: a block is layout-legal if it covers the whole batch (grid == 1)
    or if the flattened index blocks (block_b*Nu, 1)/(block_b*Ni, 1) keep their
    sublane dim a multiple of 8.  Among legal blocks, prefer the largest one
    that still yields >= min_steps grid steps (so v7x can use both TCs).
    """
    def ok(bb):
        return bb == batch or ((bb * nu) % 8 == 0 and (bb * ni) % 8 == 0)

    cands = [bb for bb in range(1, batch + 1) if batch % bb == 0 and ok(bb)]
    multi = [bb for bb in cands if batch // bb >= min_steps]
    return max(multi) if multi else max(cands)


def mf_forward(user_table, item_table, user_indices, item_indices, *, block_b=None):
    """Matrix-factorization forward with the embedding gather fused in-kernel."""
    num_users, d = user_table.shape
    num_items, d2 = item_table.shape
    assert d == d2
    batch, nu = user_indices.shape
    batch2, ni = item_indices.shape
    assert batch == batch2

    if block_b is None:
        block_b = _pick_block_b(batch, nu, ni)
    assert batch % block_b == 0
    grid_steps = batch // block_b

    # Flatten indices to (B*N, 1) int32: trivially (8,128)-legal VMEM tiles and
    # directly broadcastable against the one-hot iota inside the kernel.
    uidx = user_indices.astype(jnp.int32).reshape(batch * nu, 1)
    iidx = item_indices.astype(jnp.int32).reshape(batch * ni, 1)

    kernel = functools.partial(_mf_kernel, block_b, nu, ni, num_users, num_items)

    out = pl.pallas_call(
        kernel,
        out_shape=jax.ShapeDtypeStruct((batch, nu, ni), jnp.float32),
        grid=(grid_steps,),
        in_specs=[
            pl.BlockSpec((block_b * nu, 1), lambda g: (g, 0)),
            pl.BlockSpec((block_b * ni, 1), lambda g: (g, 0)),
            # Tables: full (E, D) blocks, grid-invariant (same block each step).
            pl.BlockSpec((num_users, d), lambda g: (0, 0)),
            pl.BlockSpec((num_items, d), lambda g: (0, 0)),
        ],
        # Last two block dims equal the full (Nu, Ni) extents -> always legal.
        out_specs=pl.BlockSpec((block_b, nu, ni), lambda g: (g, 0, 0)),
        compiler_params=pltpu.CompilerParams(
            # Batch-block axis is independent -> shard across TensorCores (v7x).
            dimension_semantics=("parallel",),
        ),
    )(uidx, iidx, user_table, item_table)

    # torch .squeeze() removes all size-1 dims.
    return jnp.squeeze(out)


if __name__ == "__main__":
    key = jax.random.PRNGKey(0)
    k_u, k_i, k_ui, k_ii = jax.random.split(key, 4)

    num_users, num_items, embedding_dim = 64, 48, 32
    B, Nu, Ni = 2, 8, 8

    # nn.Embedding default init: N(0, 1)
    user_table = jax.random.normal(k_u, (num_users, embedding_dim), dtype=jnp.float32)
    item_table = jax.random.normal(k_i, (num_items, embedding_dim), dtype=jnp.float32)

    user_indices = jax.random.randint(k_ui, (B, Nu), 0, num_users, dtype=jnp.int32)
    item_indices = jax.random.randint(k_ii, (B, Ni), 0, num_items, dtype=jnp.int32)

    out = mf_forward(user_table, item_table, user_indices, item_indices)
    out = jax.block_until_ready(out)

    # Reference check (pure JAX, full-precision matmul)
    ue = jnp.take(user_table, user_indices, axis=0)
    ie = jnp.take(item_table, item_indices, axis=0)
    ref = jnp.squeeze(jnp.einsum("bud,bid->bui", ue, ie,
                                 precision=jax.lax.Precision.HIGHEST))
    assert out.shape == ref.shape, (out.shape, ref.shape)
    assert jnp.allclose(out, ref, atol=1e-4, rtol=1e-4)

    print("KERNEL_OK")
</pallas_src>

<mosaic_0001>
module attributes {stable_mosaic.version = 11 : i64} {
  func.func @_mf_kernel(%arg0: i32, %arg1: memref<8x1xi32, #tpu.memory_space<vmem>>, %arg2: memref<8x1xi32, #tpu.memory_space<vmem>>, %arg3: memref<64x32xf32, #tpu.memory_space<vmem>>, %arg4: memref<48x32xf32, #tpu.memory_space<vmem>>, %arg5: memref<1x8x8xf32, #tpu.memory_space<vmem>>) attributes {dimension_semantics = [#tpu.dimension_semantics<parallel>], iteration_bounds = array<i64: 2>, scalar_prefetch = 0 : i64, scratch_operands = 0 : i64, tpu.core_type = #tpu.core_type<tc>, window_params = [{transform_indices = @transform_0, window_bounds = array<i64: 8, 1>}, {transform_indices = @transform_1, window_bounds = array<i64: 8, 1>}, {pipeline_mode = #tpu.pipeline_mode<synchronous>, transform_indices = @transform_2, window_bounds = array<i64: 64, 32>}, {pipeline_mode = #tpu.pipeline_mode<synchronous>, transform_indices = @transform_3, window_bounds = array<i64: 48, 32>}, {transform_indices = @transform_4, window_bounds = array<i64: 1, 8, 8>}]} {
    %c0 = arith.constant 0 : index
    %c0_0 = arith.constant 0 : index
    %0 = vector.load %arg1[%c0, %c0_0] : memref<8x1xi32, #tpu.memory_space<vmem>>, vector<8x1xi32>
    %1 = tpu.iota {dimensions = array<i32: 1>} : vector<8x64xi32>
    %2 = vector.broadcast %0 : vector<8x1xi32> to vector<8x64xi32>
    %3 = arith.cmpi eq, %2, %1 : vector<8x64xi32>
    %4 = arith.extui %3 : vector<8x64xi1> to vector<8x64xi32>
    %5 = arith.sitofp %4 : vector<8x64xi32> to vector<8x64xf32>
    %c0_1 = arith.constant 0 : index
    %c0_2 = arith.constant 0 : index
    %6 = vector.load %arg2[%c0_1, %c0_2] : memref<8x1xi32, #tpu.memory_space<vmem>>, vector<8x1xi32>
    %7 = tpu.iota {dimensions = array<i32: 1>} : vector<8x48xi32>
    %8 = vector.broadcast %6 : vector<8x1xi32> to vector<8x48xi32>
    %9 = arith.cmpi eq, %8, %7 : vector<8x48xi32>
    %10 = arith.extui %9 : vector<8x48xi1> to vector<8x48xi32>
    %11 = arith.sitofp %10 : vector<8x48xi32> to vector<8x48xf32>
    %c0_3 = arith.constant 0 : index
    %c0_4 = arith.constant 0 : index
    %12 = vector.load %arg3[%c0_3, %c0_4] : memref<64x32xf32, #tpu.memory_space<vmem>>, vector<64x32xf32>
    %cst = arith.constant dense<0.000000e+00> : vector<8x32xf32>
    %13 = tpu.matmul %5, %12, %cst {dimension_numbers = #tpu.dot_dimension_numbers<[1], [0], [0], [1], [0, 0, 1, 1], [], []>} : vector<8x64xf32>, vector<64x32xf32>, vector<8x32xf32> -> vector<8x32xf32>
    %c0_5 = arith.constant 0 : index
    %c0_6 = arith.constant 0 : index
    %14 = vector.load %arg4[%c0_5, %c0_6] : memref<48x32xf32, #tpu.memory_space<vmem>>, vector<48x32xf32>
    %cst_7 = arith.constant dense<0.000000e+00> : vector<8x32xf32>
    %15 = tpu.matmul %11, %14, %cst_7 {dimension_numbers = #tpu.dot_dimension_numbers<[1], [0], [0], [1], [0, 0, 1, 1], [], []>} : vector<8x48xf32>, vector<48x32xf32>, vector<8x32xf32> -> vector<8x32xf32>
    %16 = vector.shape_cast %13 : vector<8x32xf32> to vector<1x8x32xf32>
    %17 = vector.shape_cast %15 : vector<8x32xf32> to vector<1x8x32xf32>
    "tpu.trace_start"() <{level = 10 : i32, message = "bud,bid->bui"}> : () -> ()
    %cst_8 = arith.constant dense<0.000000e+00> : vector<1x8x8xf32>
    %18 = tpu.matmul %16, %17, %cst_8 {dimension_numbers = #tpu.dot_dimension_numbers<[2], [2], [1], [1], [0, 0, 0, 1, 1, 1], [0], [0]>} : vector<1x8x32xf32>, vector<1x8x32xf32>, vector<1x8x8xf32> -> vector<1x8x8xf32>
    "tpu.trace_stop"() : () -> ()
    %c0_9 = arith.constant 0 : index
    %c0_10 = arith.constant 0 : index
    %c0_11 = arith.constant 0 : index
    %19 = vector.load %arg5[%c0_9, %c0_10, %c0_11] : memref<1x8x8xf32, #tpu.memory_space<vmem>>, vector<1x8x8xf32>
    tpu.vector_store %arg5[%c0_9, %c0_10, %c0_11], %18 {strides = array<i32>} : memref<1x8x8xf32, #tpu.memory_space<vmem>>, vector<1x8x8xf32>,
    return
  }
  func.func @transform_0(%arg0: i32) -> (i32, i32) {
    %c0_i32 = arith.constant 0 : i32
    %c0_i32_0 = arith.constant 0 : i32
    return %arg0, %c0_i32 : i32, i32
  }
  func.func @transform_1(%arg0: i32) -> (i32, i32) {
    %c0_i32 = arith.constant 0 : i32
    %c0_i32_0 = arith.constant 0 : i32
    return %arg0, %c0_i32 : i32, i32
  }
  func.func @transform_2(%arg0: i32) -> (i32, i32) {
    %c0_i32 = arith.constant 0 : i32
    %c0_i32_0 = arith.constant 0 : i32
    %c0_i32_1 = arith.constant 0 : i32
    return %c0_i32, %c0_i32_0 : i32, i32
  }
  func.func @transform_3(%arg0: i32) -> (i32, i32) {
    %c0_i32 = arith.constant 0 : i32
    %c0_i32_0 = arith.constant 0 : i32
    %c0_i32_1 = arith.constant 0 : i32
    return %c0_i32, %c0_i32_0 : i32, i32
  }
  func.func @transform_4(%arg0: i32) -> (i32, i32, i32) {
    %c0_i32 = arith.constant 0 : i32
    %c0_i32_0 = arith.constant 0 : i32
    %c0_i32_1 = arith.constant 0 : i32
    return %arg0, %c0_i32, %c0_i32_0 : i32, i32, i32
  }
}

</mosaic_0001>

<bundles_post_ra>
// kernel: tpu_custom_call.1
= control target key start
LH: loop header
LB: loop body
LE: loop exit
PB: predicated region body
PF: predicated region fallthrough
CT: control target
= control target key end

     0   :  { %9 = vsyncpa [#allocation3], 0  ;;  %s684_s0 = inlined_call_operand.vmem [shape: s32[16,1], index: 0, kind: input, shape index: {}]   ;;  %s685_s1 = inlined_call_operand.vmem [shape: s32[16,1], index: 1, kind: input, shape index: {}]   ;;  %s686_s2 = inlined_call_operand.vmem [shape: f32[64,32], index: 2, kind: input, shape index: {}]   ;;  %s687_s3 = inlined_call_operand.vmem [shape: f32[48,32], index: 3, kind: input, shape index: {}]   ;;  %s688_s4 = inlined_call_operand.hbm [shape: f32[2,8,8], index: 4, kind: output, shape index: {}]  }
   0x1   :  { %11 = vsyncpa [#allocation3 + $0x1], 0  ;;  %s554_s15 = smov 0   ;;  %s556_s16 = smov 0  }
   0x2   :  { %s558_s17 = smov 0   ;;  %s560_s18 = smov 0  }
   0x3 LB: > { %s575_s19 = sadd.s32 4294967295, %s525_s18   ;;  %s404_s20 = sadd.s32 4294967294, %s525_s18   ;;  %s525_s18 = sphi %s560_s18, %s694_s18   ;;  %s521_s17 = sphi %s558_s17, %s693_s17   ;;  %s517_s16 = sphi %s556_s16, %s692_s16   ;;  %s513_s15 = sphi %s554_s15, %s691_s15  }
   0x4   : > { %s579_s21 = sadd.s32 1, %s525_s18   ;;  %s118_s22 = sadd.s32 1, %s521_s17 }
   0x5   : > { %s115_s23 = ssub.s32 %s525_s18, %s579_s21  ;;  %p128_p0 = scmp.ne.s32.totalorder %s521_s17, %s517_s16 }
   0x6   : > { %p116_p1 = scmp.eq.s32.totalorder %s115_s23, 0  ;;  %p129_p2 = scmp.eq.s32.totalorder %s575_s19, 1 }
   0x7   : > { %p134_p3 = scmp.ne.s32.totalorder %s517_s16, %s513_s15  ;;  %p135_p4 = scmp.eq.s32.totalorder %s404_s20, 1 }
   0x8   : > { %s590_s24 = scalar_select %p116_p1, %s521_s17, %s118_s22  }
   0x9   : > { %p592_p5 = por %p129_p2, %p128_p0  ;;  %p596_p6 = por %p135_p4, %p134_p3 }
   0xa   : > { %p407_p7 = scmp.ge.s32.totalorder %s525_s18, 1  ;;  %p173_p8 = scmp.lt.s32.totalorder %s525_s18, 3 }
   0xc   : > { %p174_p9 = pnand %p407_p7, %p173_p8 }
   0xd   : > { %p202_p10 = scmp.lt.s32.totalorder (!%p174_p9), %s575_s19, 1  ;;  %s199_s29 = sand.u32 (!%p174_p9), 1, %s517_s16  }
   0xe   : > { %177 = sbr.rel (%p174_p9) target bundleno = 410 (0x19a), region = 36  ;;  %s408_s30 = sshll.u32 (!%p174_p9), %s199_s29, 3 }
   0xf   : > { %s418_s5 = sshll.u32 (!%p174_p9), %s575_s19, 3  ;;  %s318_s12 = scalar_lea.sflag (!%p174_p9), [#allocation3], %s199_s29 }
  0x10   : > { %s328_s8 = scalar_lea.hbm (!%p174_p9), %s688_s4, %s418_s5 }
  0x11   : > { %s332_s11 = sshll.u32 (!%p174_p9), %s328_s8, 4  ;;  %s333_s11 = int_to_ptr.hbm [resolvable:$true] %s332_s11 }
  0x12   : > { %s477_s13 = sshra.s32 (!%p174_p9), %s333_s11, 4  ;;  %s478_s13 = int_to_ptr.hbm [resolvable:$true] %s477_s13 }
  0x13   : > { %v263_v0 = vld [vmem:[%s687_s3 + $0x28] sm:$0xff]  ;;  %v262_v1 = vld [vmem:[%s687_s3 + $0x20] sm:$0xff]  ;;  %v233_v2 = vld [vmem:[%s686_s2 + $0x38] sm:$0xff]  ;;  %v527_v3 = vmov 0   ;;  %s203_s9 = scalar_select %p202_p10, %s575_s19, 1  ;;  %v211_v17 = vlaneseq  ;;  %vm264_vm0 = vcmask 392192  }
  0x14   : > { %462 = vset.pattern.permute.xlu0 %v527_v3  ;;  %278 = vmatpush.msra.mxu1 %v263_v0  ;;  %v232_v4 = vld [vmem:[%s686_s2 + $0x30] sm:$0xff]  ;;  %v261_v5 = vld [vmem:[%s687_s3 + $0x18] sm:$0xff]  ;;  %v231_v6 = vld [vmem:[%s686_s2 + $0x28] sm:$0xff]  ;;  %v528_v20 = vmov 0.0   ;;  %vm234_vm2 = vcmask 523264   ;;  %vm288_vm4 = vcmask 261120   ;;  %p484_p0 = scmp.lt.s32.totalorder %s478_s13, %s688_s4 }
  0x15   : > { %246 = vmatpush.msra.mxu0 %v233_v2  ;;  %s409_s14 = sshll.u32 %s203_s9, 3  ;;  %v260_v7 = vld [vmem:[%s687_s3 + $0x10] sm:$0xff]  ;;  %v259_v9 = vld [vmem:[%s687_s3 + $0x8] sm:$0xff]  ;;  %v230_v11 = vld [vmem:[%s686_s2 + $0x20] sm:$0xff]  ;;  %v212_v18 = vand.u32 127, %v211_v17  ;;  %s201_s9 = scalar_lea.vmem [#allocation2], %s408_s30 }
  0x16   : > { %279 = vmatpush.msra.mxu1 %v262_v1  ;;  %s209_s28 = scalar_lea.vmem %s685_s1, %s409_s14  ;;  %s205_s7 = scalar_lea.vmem %s684_s0, %s409_s14  ;;  %v258_v12 = vld [vmem:[%s687_s3] sm:$0xff]  ;;  %v229_v13 = vld [vmem:[%s686_s2 + $0x18] sm:$0xff]  ;;  %v228_v14 = vld [vmem:[%s686_s2 + $0x10] sm:$0xff]  ;;  %vm315_vm5 = vcmask 64512  }
  0x17   : > { %247 = vmatpush.msra.mxu0 %v232_v4  ;;  %v219_v8 = vld [vmem:[%s209_s28] sm:$0xff]  ;;  %v227_v15 = vld [vmem:[%s686_s2 + $0x8] sm:$0xff]  ;;  %s330_s10 = sshll.u32 %s201_s9, 4  ;;  %s479_s20 = scalar_lea.hbm %s478_s13, 8  ;;  %s331_s10 = int_to_ptr.vmem [resolvable:$true] %s330_s10 }
  0x18   : > { %280 = vmatpush.msra.mxu1 %v261_v5  ;;  %221 = vperm.xlu0 %462, %v219_v8   ;;  %v210_v10 = vld [vmem:[%s205_s7] sm:$0xff]  ;;  %p480_p11 = scmp.ne.s32.totalorder %s478_s13, %s479_s20  ;;  %s483_s14 = scalar_lea.hbm %s688_s4, 16 }
  0x19   : > { %248 = vmatpush.msra.mxu0 %v231_v6  ;;  %v226_v16 = vld [vmem:[%s686_s2] sm:$0xff]  ;;  %p485_p1 = scmp.lt.s32.totalorder %s483_s14, %s479_s20 }
  0x1a   : > { %281 = vmatpush.msra.mxu1 %v260_v7  ;;  %p481_p12 = pnand %p480_p11, %p592_p5 }
  0x1b   : > { %249 = vmatpush.msra.mxu0 %v230_v11  ;;  %p486_p2 = por %p485_p1, %p484_p0 }
  0x1c   : > { %282 = vmatpush.msra.mxu1 %v259_v9  ;;  %p482_p13 = pneg %p481_p12 }
  0x1d   : > { %250 = vmatpush.msra.mxu0 %v229_v13 }
  0x1e   : > { %283 = vmatpush.msra.mxu1 %v258_v12  ;;  %p487_p3 = pnand %p486_p2, %p482_p13 }
  0x1f   : > { %251 = vmatpush.msra.mxu0 %v228_v14 }
  0x20   : > { %214 = vperm.xlu0 %462, %v210_v10  }
  0x21   : > { %252 = vmatpush.msra.mxu0 %v227_v15 }
  0x23   : > { %253 = vmatpush.msra.mxu0 %v226_v16 }
  0x8a   : > { %v222_v19 = vpop.permute.xlu0 %221 }
  0x8b   : > { %vm223_vm1 = vcmp.eq.s32.totalorder %v222_v19, %v212_v18 }
  0x8c   : > { %v412_v21 = vsel %vm223_vm1, 1.0, %v528_v20 }
  0x8d   : > { %414 = vmatmul.msk.f32.vlgmr.msra.gmra.mxu1 %vm264_vm0, %v412_v21 }
  0x92   : > { %v215_v22 = vpop.permute.xlu0 %214 }
  0x93   : > { %vm216_vm3 = vcmp.eq.s32.totalorder %v215_v22, %v212_v18 }
  0x94   : > { %v411_v23 = vsel %vm216_vm3, 1.0, %v528_v20 }
  0x95   : > { %413 = vmatmul.msk.f32.vlgmr.msra.gmra.mxu0 %vm234_vm2, %v411_v23 }
 0x10a   : > { %v285_v24 = vpop.f32.mrf.mxu1 }
 0x10b   : > { %415 = vmatpush.xpose.msk.msra.mxu2 %vm288_vm4, %v285_v24 }
 0x112   : > { %v255_v25 = vpop.f32.mrf.mxu0 }
 0x113   : > { %416 = vmatmul.msk.f32.vlgmr.msra.gmra.mxu2 %vm288_vm4, %v255_v25 }
 0x196   : > { %v312_v26 = vpop.f32.mrf.mxu2 }
 0x197   : > { %316 = vst.msk [vmem:[%s201_s9] sm:$0xff] %vm315_vm5, %v312_v26 }
 0x198   : > { %490 = shalt.err (!%p487_p3)
}
 0x199   : > { %421 = dma.vmem_to_hbm [thread:$0]  (%p592_p5), %s331_s10, 128, %s333_s11, %s318_s12  }
 0x19a PF: > { %p427_p4 = scmp.ge.s32.totalorder %s525_s18, 2  ;;  %s344_s28 = sand.u32 1, %s513_s15  }
 0x19b   : > { %s345_s29 = scalar_lea.sflag [#allocation3], %s344_s28 }
 0x19c   : > { %p424_p7 = pnand %p427_p4, %p596_p6 }
 0x19e   : > { %p425_p8 = pneg %p424_p7 }
 0x1a0   : > { %508 = dma.done.wait (%p425_p8), %s345_s29, 128  }
 0x1a1   : > { %510 = vsyncadd (%p425_p8), %s345_s29, 4294967168  ;;  %p14_p9 = scmp.ge.s32.totalorder %s579_s21, 4   ;;  %s691_s15 = smov %s517_s16 }
 0x1a2   : > { %s692_s16 = smov %s521_s17  ;;  %s693_s17 = smov %s590_s24 }
 0x1a3   : > { %s694_s18 = smov %s579_s21  ;;  %16 = sbr.rel (!%p14_p9) target bundleno = 3 (0x3), region = 74 }
 0x1a8   :  { %351 = vsyncpa [#allocation3], 1 }
 0x1a9   :  { %353 = vsyncpa [#allocation3 + $0x1], 1 }

</bundles_post_ra>
